<compile_context>
chip_gen: v7x
topology: tpu7x:2x2x1
jax: 0.10.0
libtpu: 0.0.40
codegen_flags: <defaults>
</compile_context>

<pallas_src>
import functools

import jax
import jax.numpy as jnp
from jax.experimental import pallas as pl
from jax.experimental.pallas import tpu as pltpu


def _round_up(x: int, m: int) -> int:
    return (x + m - 1) // m * m


def _negbin_kernel(h_ref, w_ref, be_ref, out_ref):
    # One fused matmul for both heads; f32 accumulation on the MXU.
    z = jnp.dot(h_ref[...], w_ref[...],
                preferred_element_type=jnp.float32) + be_ref[0:1, :]
    # Numerically stable softplus in f32.
    sp = jnp.maximum(z, 0.0) + jnp.log1p(jnp.exp(-jnp.abs(z)))
    # Row 1 of be_ref is 0 for mu columns, 1e-6 for alpha columns.
    out_ref[...] = (sp + be_ref[1:2, :]).astype(out_ref.dtype)


@functools.partial(jax.jit, static_argnames=("rows_per_block", "use_bf16"))
def negative_binomial_forward(h, w_mu, b_mu, w_sigma, b_sigma,
                              *, rows_per_block: int = 512,
                              use_bf16: bool = False):
    """DeepAR NegativeBinomial head.

    Args:
      h:        (B, input_size)            hidden states (rows = batch*time).
      w_mu:     (input_size, output_size)  mu weights (pre-transposed).
      b_mu:     (1, output_size)           mu bias.
      w_sigma:  (input_size, output_size)  sigma weights (pre-transposed).
      b_sigma:  (1, output_size)           sigma bias.
      rows_per_block: rows per grid step. Keep <= ~4K so double-buffered f32
        blocks fit comfortably under v7x's default 32 MiB scoped VMEM.
      use_bf16: cast h and the fused weights to bf16 for the matmul
        (bf16-native MXU on v6e/v7x); accumulation/softplus stay f32.

    Returns:
      (mu, alpha), each (B, output_size) float32.
    """
    B, H = h.shape
    _, O = w_mu.shape
    N = 2 * O
    N_pad = _round_up(N, 128)          # lane-dense output width

    # Fuse both heads into one (H, 2*O) weight / (1, 2*O) bias, zero-pad lanes.
    w_cat = jnp.concatenate([w_mu, w_sigma], axis=1)
    b_cat = jnp.concatenate([b_mu, b_sigma], axis=1).astype(jnp.float32)
    w_cat = jnp.pad(w_cat, ((0, 0), (0, N_pad - N)))
    b_cat = jnp.pad(b_cat, ((0, 0), (0, N_pad - N)))

    # Post-softplus offset: 0 for mu columns, 1e-6 for alpha columns; packed
    # together with the bias into a single (2, N_pad) resident operand.
    eps = jnp.concatenate(
        [jnp.zeros((1, O), jnp.float32),
         jnp.full((1, O), 1e-6, jnp.float32),
         jnp.zeros((1, N_pad - N), jnp.float32)], axis=1)
    bias_eps = jnp.concatenate([b_cat, eps], axis=0)        # (2, N_pad) f32

    # Row tiling: pad rows to a multiple of the (8-aligned) block size.
    block_rows = min(rows_per_block, max(8, _round_up(B, 8)))
    block_rows = _round_up(block_rows, 8)
    B_pad = _round_up(B, block_rows)
    h_pad = jnp.pad(h, ((0, B_pad - B), (0, 0)))

    if use_bf16:
        h_pad = h_pad.astype(jnp.bfloat16)
        w_cat = w_cat.astype(jnp.bfloat16)

    grid = (B_pad // block_rows,)

    out = pl.pallas_call(
        _negbin_kernel,
        out_shape=jax.ShapeDtypeStruct((B_pad, N_pad), jnp.float32),
        grid_spec=pltpu.PrefetchScalarGridSpec(
            num_scalar_prefetch=0,
            grid=grid,
            in_specs=[
                pl.BlockSpec((block_rows, H), lambda i: (i, 0)),   # h rows
                pl.BlockSpec((H, N_pad), lambda i: (0, 0)),        # fused W
                pl.BlockSpec((2, N_pad), lambda i: (0, 0)),        # bias + eps
            ],
            out_specs=pl.BlockSpec((block_rows, N_pad), lambda i: (i, 0)),
        ),
        compiler_params=pltpu.CompilerParams(
            dimension_semantics=("parallel",)),   # v7x: shard rows across 2 TCs
    )(h_pad, w_cat, bias_eps)

    mu = out[:B, :O]
    alpha = out[:B, O:N]
    return mu, alpha


if __name__ == "__main__":
    input_size = 32   # hidden h_{i,t} column size
    output_size = 16  # embedding size
    batch = 8

    key = jax.random.PRNGKey(0)
    k_h, k_wm, k_bm, k_ws, k_bs = jax.random.split(key, 5)

    h = jax.random.normal(k_h, (batch, input_size), dtype=jnp.float32)

    # Deterministic "nn.Linear"-style init (uniform in +/- 1/sqrt(fan_in)).
    bound = 1.0 / jnp.sqrt(jnp.float32(input_size))
    w_mu = jax.random.uniform(k_wm, (input_size, output_size),
                              minval=-bound, maxval=bound, dtype=jnp.float32)
    b_mu = jax.random.uniform(k_bm, (1, output_size),
                              minval=-bound, maxval=bound, dtype=jnp.float32)
    w_sigma = jax.random.uniform(k_ws, (input_size, output_size),
                                 minval=-bound, maxval=bound, dtype=jnp.float32)
    b_sigma = jax.random.uniform(k_bs, (1, output_size),
                                 minval=-bound, maxval=bound, dtype=jnp.float32)

    mu, alpha = negative_binomial_forward(h, w_mu, b_mu, w_sigma, b_sigma)
    jax.block_until_ready((mu, alpha))

    # Cross-check against plain JAX reference (stable softplus).
    mu_ref = jax.nn.softplus(h @ w_mu + b_mu)
    alpha_ref = jax.nn.softplus(h @ w_sigma + b_sigma) + 1e-6
    assert mu.shape == (batch, output_size)
    assert alpha.shape == (batch, output_size)
    assert jnp.allclose(mu, mu_ref, atol=1e-5), "mu mismatch"
    assert jnp.allclose(alpha, alpha_ref, atol=1e-5), "alpha mismatch"

    print("KERNEL_OK")
</pallas_src>

<mosaic_0001>
module attributes {stable_mosaic.version = 11 : i64} {
  func.func @_negbin_kernel(%arg0: i32, %arg1: memref<8x32xf32, #tpu.memory_space<vmem>>, %arg2: memref<32x128xf32, #tpu.memory_space<vmem>>, %arg3: memref<2x128xf32, #tpu.memory_space<vmem>>, %arg4: memref<8x128xf32, #tpu.memory_space<vmem>>) attributes {dimension_semantics = [#tpu.dimension_semantics<parallel>], iteration_bounds = array<i64: 1>, scalar_prefetch = 0 : i64, scratch_operands = 0 : i64, tpu.core_type = #tpu.core_type<tc>, window_params = [{transform_indices = @transform_0, window_bounds = array<i64: 8, 32>}, {pipeline_mode = #tpu.pipeline_mode<synchronous>, transform_indices = @transform_1, window_bounds = array<i64: 32, 128>}, {pipeline_mode = #tpu.pipeline_mode<synchronous>, transform_indices = @transform_2, window_bounds = array<i64: 2, 128>}, {transform_indices = @transform_3, window_bounds = array<i64: 8, 128>}]} {
    %c0 = arith.constant 0 : index
    %c0_0 = arith.constant 0 : index
    %0 = vector.load %arg1[%c0, %c0_0] : memref<8x32xf32, #tpu.memory_space<vmem>>, vector<8x32xf32>
    %c0_1 = arith.constant 0 : index
    %c0_2 = arith.constant 0 : index
    %1 = vector.load %arg2[%c0_1, %c0_2] : memref<32x128xf32, #tpu.memory_space<vmem>>, vector<32x128xf32>
    %cst = arith.constant dense<0.000000e+00> : vector<8x128xf32>
    %2 = tpu.matmul %0, %1, %cst {dimension_numbers = #tpu.dot_dimension_numbers<[1], [0], [0], [1], [0, 0, 1, 1], [], []>} : vector<8x32xf32>, vector<32x128xf32>, vector<8x128xf32> -> vector<8x128xf32>
    %c0_3 = arith.constant 0 : index
    %c0_4 = arith.constant 0 : index
    %3 = vector.load %arg3[%c0_3, %c0_4] : memref<2x128xf32, #tpu.memory_space<vmem>>, vector<1x128xf32>
    %4 = vector.broadcast %3 : vector<1x128xf32> to vector<8x128xf32>
    %5 = arith.addf %2, %4 : vector<8x128xf32>
    %cst_5 = arith.constant 0.000000e+00 : f32
    %6 = vector.broadcast %cst_5 : f32 to vector<8x128xf32>
    %7 = arith.maximumf %5, %6 : vector<8x128xf32>
    %8 = math.absf %5 : vector<8x128xf32>
    %cst_6 = arith.constant 0.000000e+00 : f32
    %9 = vector.broadcast %cst_6 : f32 to vector<8x128xf32>
    %10 = arith.subf %9, %8 : vector<8x128xf32>
    %11 = math.exp %10 : vector<8x128xf32>
    %12 = math.log1p %11 : vector<8x128xf32>
    %13 = arith.addf %7, %12 : vector<8x128xf32>
    %c1 = arith.constant 1 : index
    %c0_7 = arith.constant 0 : index
    %14 = vector.load %arg3[%c1, %c0_7] : memref<2x128xf32, #tpu.memory_space<vmem>>, vector<1x128xf32>
    %15 = vector.broadcast %14 : vector<1x128xf32> to vector<8x128xf32>
    %16 = arith.addf %13, %15 : vector<8x128xf32>
    %c0_8 = arith.constant 0 : index
    %c0_9 = arith.constant 0 : index
    %17 = vector.load %arg4[%c0_8, %c0_9] : memref<8x128xf32, #tpu.memory_space<vmem>>, vector<8x128xf32>
    tpu.vector_store %arg4[%c0_8, %c0_9], %16 {strides = array<i32>} : memref<8x128xf32, #tpu.memory_space<vmem>>, vector<8x128xf32>,
    return
  }
  func.func @transform_0(%arg0: i32) -> (i32, i32) {
    %c0_i32 = arith.constant 0 : i32
    %c0_i32_0 = arith.constant 0 : i32
    return %arg0, %c0_i32 : i32, i32
  }
  func.func @transform_1(%arg0: i32) -> (i32, i32) {
    %c0_i32 = arith.constant 0 : i32
    %c0_i32_0 = arith.constant 0 : i32
    %c0_i32_1 = arith.constant 0 : i32
    return %c0_i32, %c0_i32_0 : i32, i32
  }
  func.func @transform_2(%arg0: i32) -> (i32, i32) {
    %c0_i32 = arith.constant 0 : i32
    %c0_i32_0 = arith.constant 0 : i32
    %c0_i32_1 = arith.constant 0 : i32
    return %c0_i32, %c0_i32_0 : i32, i32
  }
  func.func @transform_3(%arg0: i32) -> (i32, i32) {
    %c0_i32 = arith.constant 0 : i32
    %c0_i32_0 = arith.constant 0 : i32
    return %arg0, %c0_i32 : i32, i32
  }
}

</mosaic_0001>

<bundles_post_ra>
// kernel: negative_binomial_forward.1
= control target key start
LH: loop header
LB: loop body
LE: loop exit
PB: predicated region body
PF: predicated region fallthrough
CT: control target
= control target key end

     0   :  { %v156_v0 = vmov 0.0|0.0   ;;  %vm157_vm0 = vmmov 0   ;;  %v158_v4 = vmov 0.0   ;;  %vm24_vm1 = vcmask 261120   ;;  %s203_s1 = inlined_call_operand.vmem [shape: f32[32,128], index: 1, kind: input, shape index: {}]   ;;  %s204_s0 = inlined_call_operand.vmem [shape: f32[8,32], index: 0, kind: input, shape index: {}]   ;;  %s205_s2 = inlined_call_operand.vmem [shape: f32[2,128], index: 2, kind: input, shape index: {}]   ;;  %s206_s3 = inlined_call_operand.vmem [shape: f32[8,128], index: 3, kind: output, shape index: {}]  }
   0x1   :  { %143 = vmatprep.subr.bf16.mxu0 %v156_v0  ;;  %v15_v1 = vld [vmem:[%s203_s1] sm:$0xff]  ;;  %v16_v2 = vld [vmem:[%s203_s1 + $0x8] sm:$0xff]  ;;  %v17_v3 = vld [vmem:[%s203_s1 + $0x10] sm:$0xff]  ;;  %140 = vmatprep.mubr.msk.f32.mxu0 %vm157_vm0, %v158_v4 }
   0x2   :  { %v144_v5 = vpack.c.bf16 %v16_v2, %v15_v1  ;;  %v18_v6 = vld [vmem:[%s203_s1 + $0x18] sm:$0xff]  ;;  %v14_v8 = vld [vmem:[%s204_s0] sm:$0xff] }
   0x3   :  { %v147_v7 = vpack.c.bf16 %v18_v6, %v17_v3  ;;  %v124_v9 = vld [vmem:[%s205_s2] ss:$0 sm:$0xff]  ;;  %v126_v26 = vld [vmem:[%s205_s2 + $0x1] ss:$0 sm:$0xff] }
   0x4   :  { %145 = vmatpush3.bf16.msra.mxu0 %v144_v5 }
   0x5   :  { %146 = vmatprep.subr.bf16.mxu0 %v156_v0 }
   0x8   :  { %148 = vmatpush3.bf16.msra.mxu0 %v147_v7 }
   0xb   :  { %141 = vmatmul.mubr.msk.f32.vlgmr.msra.gmra.mrb[0].mxu0 %vm24_vm1, %v14_v8 }
  0xde   :  { %v94_v10 = vpop.f32.mrb[0].mxu0 }
  0xdf   :  { %v95_v11 = vadd.f32 %v124_v9, %v94_v10  ;;  %v142_v12 = vpop.f32.mrb[1].mxu0 }
  0xe1   :  { %v99_v13 = vand.u32 2147483647, %v95_v11  ;;  %v98_v24 = vmax.f32 %v95_v11, 0.0 }
  0xe3   :  { %v100_v14 = vsub.f32 0.0, %v99_v13 }
  0xe5   :  { %v101_v15 = vmul.f32 1.442695, %v100_v14 }
  0xe7   :  { %152 = vpow2.f32 %v101_v15 }
  0xf1   :  { %v153_v16 = vpop.eup %152 }
  0xf2   :  { %v103_v17 = vadd.f32 1.0, %v153_v16  ;;  %v106_v18 = vmul.f32 -0.5, %v153_v16  ;;  %v109_v20 = vand.u32 2147483647, %v153_v16 }
  0xf4   :  { %154 = vlog2.f32 %v103_v17  ;;  %v107_v19 = vadd.f32 1.0, %v106_v18  ;;  %vm110_vm2 = vcmp.lt.f32.partialorder %v109_v20, 0.0004427343 }
  0xf6   :  { %v108_v23 = vmul.f32 %v153_v16, %v107_v19 }
  0xfe   :  { %v155_v21 = vpop.eup %154 }
  0xff   :  { %v105_v22 = vmul.f32 0.6931472, %v155_v21 }
 0x101   :  { %v111_v25 = vsel %vm110_vm2, %v108_v23, %v105_v22 }
 0x102   :  { %v112_v27 = vadd.f32 %v111_v25, %v98_v24 }
 0x104   :  { %v118_v28 = vadd.f32 %v126_v26, %v112_v27 }
 0x106   :  { %119 = vst [vmem:[%s206_s3] sm:$0xff] %v118_v28 }

</bundles_post_ra>
